<compile_context>
chip_gen: v7x
topology: tpu7x:2x2x1
jax: 0.10.0
libtpu: 0.0.40
codegen_flags: <defaults>
</compile_context>

<pallas_src>
import math

import numpy as np
import jax
import jax.numpy as jnp
from jax.experimental import pallas as pl
from jax.experimental.pallas import tpu as pltpu


# ----------------------------------------------------------------------------- helpers

def _round_up(x, m):
    return ((x + m - 1) // m) * m


def _vmem_limit_bytes():
    """~75% of physical VMEM (v5e/v6e: 128 MiB, v7x: 64 MiB); safe fallback 48 MiB."""
    try:
        info = pltpu.get_tpu_info()
        cap = getattr(info, "vmem_capacity_bytes", None)
        if cap:
            return (int(cap) * 3) // 4
    except Exception:
        pass
    return 48 * 1024 * 1024


def _pad_to_lanes(d):
    """Pad a lane-mapped dim to a multiple of 128 when large but unaligned
    (MLP-Mixer token mixing has mlp_dim = num_patches, e.g. 196).  Dims < 128 stay
    as-is: a block equal to the full array dim is legal and padding only wastes work."""
    if d < 128 or d % 128 == 0:
        return d
    return _round_up(d, 128)


def _vmem_cost(tile_m, tile_h, mlp_dim, x_item, out_item, c_item, chunked):
    """Bytes of VMEM this tiling needs (Pallas double-buffers every operand block)."""
    nbuf = 2
    cost = nbuf * tile_m * mlp_dim * x_item            # x row tile (in)
    cost += nbuf * tile_m * mlp_dim * out_item         # output row tile
    cost += nbuf * mlp_dim * tile_h * c_item           # W1 chunk
    cost += nbuf * tile_h * mlp_dim * c_item           # W2 chunk
    cost += nbuf * 8 * _round_up(tile_h, 128) * 4      # b1 chunk (sublane/lane padded)
    cost += nbuf * 8 * _round_up(mlp_dim, 128) * 4     # b2
    cost += tile_m * _round_up(tile_h, 128) * 4        # f32 hidden intermediate
    if chunked:
        cost += tile_m * mlp_dim * 4                   # f32 accumulator scratch
        cost += tile_m * mlp_dim * c_item              # bf16 x-cast scratch
    return cost


def _choose_tiles(n_rows, mlp_dim, hidden_dim, x_item, out_item, c_item,
                  budget_bytes, requested_tm=512):
    """Pick (tile_m, tile_h).  tile_h == hidden_dim means the un-chunked fast path."""
    if n_rows <= requested_tm:
        tm = max(8, _round_up(n_rows, 8))          # one row tile covers everything
    else:
        tm = max(256, (requested_tm // 256) * 256)  # 256-aligned for the 256x256 MXU

    def fits(tm_, th_, chunked):
        return _vmem_cost(tm_, th_, mlp_dim, x_item, out_item, c_item,
                          chunked) <= budget_bytes

    while True:
        if fits(tm, hidden_dim, chunked=False):
            return tm, hidden_dim
        if hidden_dim % 128 == 0 and hidden_dim > 128:
            for th in range(hidden_dim - 128, 127, -128):
                if hidden_dim % th == 0 and fits(tm, th, chunked=True):
                    return tm, th
        if tm <= 8:
            return tm, hidden_dim      # nothing fits cleanly; let the compiler try
        tm = max(8, _round_up(tm // 2, 8))


# ----------------------------------------------------------------------------- math

# Plain Python floats only -> jaxpr literals (no captured constants).
_INV_SQRT2 = 0.7071067811865476
_ERF_P = 0.3275911
_ERF_A1 = 0.254829592
_ERF_A2 = -0.284496736
_ERF_A3 = 1.421413741
_ERF_A4 = -1.453152027
_ERF_A5 = 1.061405429


def _erf_f32(z):
    """erf via Abramowitz & Stegun 7.1.26 (|err| <= 1.5e-7): exp/mul/add/div/where only."""
    az = jnp.abs(z)
    t = 1.0 / (1.0 + _ERF_P * az)
    poly = ((((_ERF_A5 * t + _ERF_A4) * t + _ERF_A3) * t + _ERF_A2) * t + _ERF_A1) * t
    e = 1.0 - poly * jnp.exp(-(az * az))
    return jnp.where(z < 0.0, -e, e)


def _gelu_f32(h, approximate):
    if approximate:
        return jax.nn.gelu(h, approximate=True)        # tanh form -> EUP slot
    return 0.5 * h * (1.0 + _erf_f32(h * _INV_SQRT2))  # exact (torch.nn.GELU default)


# ----------------------------------------------------------------------------- kernels

def _make_fused_kernel(compute_dtype, approximate_gelu):
    """Un-chunked hidden dim: Linear1 -> GELU -> Linear2 in one shot, no scratch."""
    def kernel(x_ref, w1_ref, b1_ref, w2_ref, b2_ref, o_ref):
        x = x_ref[...]
        if x.dtype != compute_dtype:
            x = x.astype(compute_dtype)
        h = jnp.dot(x, w1_ref[...], preferred_element_type=jnp.float32)
        h = _gelu_f32(h + b1_ref[...].astype(jnp.float32), approximate_gelu)
        # Dropout (p = 0.0 / eval mode): identity.
        out = jnp.dot(h.astype(compute_dtype), w2_ref[...],
                      preferred_element_type=jnp.float32)
        o_ref[...] = (out + b2_ref[...].astype(jnp.float32)).astype(o_ref.dtype)
    return kernel


def _make_chunked_kernel(compute_dtype, approximate_gelu, cast_x):
    """Hidden dim chunked: accumulate Linear2 partial products in an f32 scratch."""
    def chunk_body(x_val, w1_ref, b1_ref, w2_ref, acc_ref):
        h = jnp.dot(x_val, w1_ref[...], preferred_element_type=jnp.float32)
        h = _gelu_f32(h + b1_ref[...].astype(jnp.float32), approximate_gelu)
        acc_ref[...] += jnp.dot(h.astype(compute_dtype), w2_ref[...],
                                preferred_element_type=jnp.float32)

    if cast_x:
        def kernel(x_ref, w1_ref, b1_ref, w2_ref, b2_ref, o_ref, acc_ref, xc_ref):
            c = pl.program_id(1)

            @pl.when(c == 0)
            def _init():
                acc_ref[...] = jnp.zeros_like(acc_ref)
                # cast the resident x row tile to the compute dtype once per row tile
                xc_ref[...] = x_ref[...].astype(xc_ref.dtype)

            chunk_body(xc_ref[...], w1_ref, b1_ref, w2_ref, acc_ref)

            @pl.when(c == pl.num_programs(1) - 1)
            def _fin():
                o_ref[...] = (acc_ref[...]
                              + b2_ref[...].astype(jnp.float32)).astype(o_ref.dtype)
    else:
        def kernel(x_ref, w1_ref, b1_ref, w2_ref, b2_ref, o_ref, acc_ref):
            c = pl.program_id(1)

            @pl.when(c == 0)
            def _init():
                acc_ref[...] = jnp.zeros_like(acc_ref)

            chunk_body(x_ref[...], w1_ref, b1_ref, w2_ref, acc_ref)

            @pl.when(c == pl.num_programs(1) - 1)
            def _fin():
                o_ref[...] = (acc_ref[...]
                              + b2_ref[...].astype(jnp.float32)).astype(o_ref.dtype)
    return kernel


# ----------------------------------------------------------------------------- pallas_call

def _pallas_mlp(x2d, w1, b1, w2, b2, *, tile_m, tile_h, compute_dtype,
                approximate_gelu, vmem_limit):
    n_rows, mlp_dim = x2d.shape
    hidden_dim = w1.shape[1]
    n_row_tiles = pl.cdiv(n_rows, tile_m)
    n_chunks = hidden_dim // tile_h
    out_shape = jax.ShapeDtypeStruct((n_rows, mlp_dim), x2d.dtype)

    if n_chunks == 1:
        # Fast path: weights fully resident, output written directly (no scratch).
        in_specs = [
            pl.BlockSpec((tile_m, mlp_dim), lambda i: (i, 0)),
            pl.BlockSpec((mlp_dim, hidden_dim), lambda i: (0, 0)),
            pl.BlockSpec((1, hidden_dim), lambda i: (0, 0)),
            pl.BlockSpec((hidden_dim, mlp_dim), lambda i: (0, 0)),
            pl.BlockSpec((1, mlp_dim), lambda i: (0, 0)),
        ]
        out_spec = pl.BlockSpec((tile_m, mlp_dim), lambda i: (i, 0))
        return pl.pallas_call(
            _make_fused_kernel(compute_dtype, approximate_gelu),
            out_shape=out_shape,
            grid_spec=pltpu.PrefetchScalarGridSpec(
                num_scalar_prefetch=0, grid=(n_row_tiles,),
                in_specs=in_specs, out_specs=out_spec),
            compiler_params=pltpu.CompilerParams(
                dimension_semantics=("parallel",),
                vmem_limit_bytes=int(vmem_limit)),
        )(x2d, w1, b1, w2, b2)

    # Chunked path (large hidden on VMEM-limited parts): reduction axis innermost.
    cast_x = (x2d.dtype != compute_dtype)
    in_specs = [
        pl.BlockSpec((tile_m, mlp_dim), lambda i, c: (i, 0)),   # x row tile
        pl.BlockSpec((mlp_dim, tile_h), lambda i, c: (0, c)),   # W1 hidden chunk
        pl.BlockSpec((1, tile_h), lambda i, c: (0, c)),         # b1 hidden chunk
        pl.BlockSpec((tile_h, mlp_dim), lambda i, c: (c, 0)),   # W2 hidden chunk
        pl.BlockSpec((1, mlp_dim), lambda i, c: (0, 0)),        # b2
    ]
    out_spec = pl.BlockSpec((tile_m, mlp_dim), lambda i, c: (i, 0))
    scratch = [pltpu.VMEM((tile_m, mlp_dim), jnp.float32)]      # f32 accumulator
    if cast_x:
        scratch.append(pltpu.VMEM((tile_m, mlp_dim), compute_dtype))  # x cast scratch
    return pl.pallas_call(
        _make_chunked_kernel(compute_dtype, approximate_gelu, cast_x),
        out_shape=out_shape,
        grid_spec=pltpu.PrefetchScalarGridSpec(
            num_scalar_prefetch=0, grid=(n_row_tiles, n_chunks),
            in_specs=in_specs, out_specs=out_spec, scratch_shapes=scratch),
        compiler_params=pltpu.CompilerParams(
            dimension_semantics=("parallel", "arbitrary"),
            vmem_limit_bytes=int(vmem_limit)),
    )(x2d, w1, b1, w2, b2)


# ----------------------------------------------------------------------------- wrapper

def mlp_block(x, w1, b1, w2, b2, *, tile_m=512, compute_dtype=jnp.bfloat16,
              approximate_gelu=False, max_tile_h=None):
    """MLPBlock forward: Linear1 -> GELU -> (dropout=id) -> Linear2 -> (dropout=id).

    x: [..., mlp_dim]; w1: [mlp_dim, hidden]; w2: [hidden, mlp_dim] (pre-transposed
    vs. PyTorch nn.Linear). Returns same shape/dtype as x.
    max_tile_h (testing hook): cap the hidden chunk size to force the chunked path.
    """
    orig_shape = x.shape
    mlp_dim = orig_shape[-1]
    hidden_dim = w1.shape[1]
    assert w1.shape == (mlp_dim, hidden_dim)
    assert w2.shape == (hidden_dim, mlp_dim)
    assert b1.shape == (hidden_dim,)
    assert b2.shape == (mlp_dim,)

    x2d = x.reshape(-1, mlp_dim)
    n_rows = x2d.shape[0]

    # Lane-dense layout: zero-pad unaligned large dims (exact for this block —
    # padded inputs/weights/biases are zero, padded outputs are sliced off).
    mlp_pad = _pad_to_lanes(mlp_dim)
    hid_pad = _pad_to_lanes(hidden_dim)
    if mlp_pad != mlp_dim:
        x2d = jnp.pad(x2d, ((0, 0), (0, mlp_pad - mlp_dim)))
    if mlp_pad != mlp_dim or hid_pad != hidden_dim:
        w1 = jnp.pad(w1, ((0, mlp_pad - mlp_dim), (0, hid_pad - hidden_dim)))
        w2 = jnp.pad(w2, ((0, hid_pad - hidden_dim), (0, mlp_pad - mlp_dim)))
        b1 = jnp.pad(b1, (0, hid_pad - hidden_dim))
        b2 = jnp.pad(b2, (0, mlp_pad - mlp_dim))

    # MXU inputs in the compute dtype (bf16 by default); biases stay f32 row vectors.
    w1c = w1.astype(compute_dtype)
    w2c = w2.astype(compute_dtype)
    b1r = b1.reshape(1, hid_pad).astype(jnp.float32)
    b2r = b2.reshape(1, mlp_pad).astype(jnp.float32)

    vmem_limit = _vmem_limit_bytes()
    c_item = np.dtype(compute_dtype).itemsize
    x_item = np.dtype(x2d.dtype).itemsize
    tm, th = _choose_tiles(n_rows, mlp_pad, hid_pad, x_item, x_item, c_item,
                           budget_bytes=(vmem_limit * 4) // 5, requested_tm=tile_m)
    if max_tile_h is not None and hid_pad % max_tile_h == 0:
        th = min(th, max_tile_h)

    out2d = _pallas_mlp(x2d, w1c, b1r, w2c, b2r, tile_m=tm, tile_h=th,
                        compute_dtype=compute_dtype,
                        approximate_gelu=approximate_gelu,
                        vmem_limit=vmem_limit)
    if mlp_pad != mlp_dim:
        out2d = out2d[:, :mlp_dim]
    return out2d.reshape(orig_shape)


# ----------------------------------------------------------------------------- init & ref

def init_mlp_params(key, mlp_dim, hidden_dim, dtype=jnp.float32):
    """Init mirroring PyTorch nn.Linear default (uniform +/- 1/sqrt(fan_in))."""
    k1, k2, k3, k4 = jax.random.split(key, 4)
    bound1 = 1.0 / math.sqrt(mlp_dim)
    bound2 = 1.0 / math.sqrt(hidden_dim)
    w1 = jax.random.uniform(k1, (mlp_dim, hidden_dim), dtype, -bound1, bound1)
    b1 = jax.random.uniform(k2, (hidden_dim,), dtype, -bound1, bound1)
    w2 = jax.random.uniform(k3, (hidden_dim, mlp_dim), dtype, -bound2, bound2)
    b2 = jax.random.uniform(k4, (mlp_dim,), dtype, -bound2, bound2)
    return w1, b1, w2, b2


def mlp_block_ref(x, w1, b1, w2, b2, compute_dtype=jnp.bfloat16):
    """Pure-JAX reference matching the kernel's bf16-input / f32-accumulate numerics
    (uses XLA's lax.erf for the exact GELU to cross-check the kernel's polynomial)."""
    xf = x.astype(compute_dtype).astype(jnp.float32)
    w1f = w1.astype(compute_dtype).astype(jnp.float32)
    w2f = w2.astype(compute_dtype).astype(jnp.float32)
    h = xf @ w1f + b1.astype(jnp.float32)
    h = 0.5 * h * (1.0 + jax.lax.erf(h * 0.7071067811865476))
    h = h.astype(compute_dtype).astype(jnp.float32)
    return (h @ w2f + b2.astype(jnp.float32)).astype(x.dtype)


# ----------------------------------------------------------------------------- demo

if __name__ == "__main__":
    key = jax.random.PRNGKey(0)

    # 1) Basic small case (fused fast path).
    mlp_dim, hidden_dim = 16, 32
    batch, seq = 2, 8
    kx, kp, kx2, kp2, kx3, kp3 = jax.random.split(key, 6)
    x = jax.random.normal(kx, (batch, seq, mlp_dim), jnp.float32)
    w1, b1, w2, b2 = init_mlp_params(kp, mlp_dim, hidden_dim)
    out = jax.block_until_ready(mlp_block(x, w1, b1, w2, b2))
    ref = mlp_block_ref(x, w1, b1, w2, b2)
    assert out.shape == x.shape and out.dtype == x.dtype
    assert jnp.allclose(out, ref, atol=5e-3, rtol=5e-3), "mismatch vs reference"

    # 2) Row count not a multiple of 8: exercises the masked partial row block.
    x_odd = jax.random.normal(kx2, (2, 10, mlp_dim), jnp.float32)
    out_odd = jax.block_until_ready(mlp_block(x_odd, w1, b1, w2, b2))
    ref_odd = mlp_block_ref(x_odd, w1, b1, w2, b2)
    assert out_odd.shape == x_odd.shape
    assert jnp.allclose(out_odd, ref_odd, atol=5e-3, rtol=5e-3), "mismatch (tail block)"

    # 3) Unaligned dims (token-mixing style: mlp_dim = num_patches = 196) -> lane
    #    padding path; hidden chunking forced via max_tile_h on an aligned variant.
    mlp_u, hid_u = 196, 200
    x_u = jax.random.normal(kx3, (3, 8, mlp_u), jnp.float32)
    w1u, b1u, w2u, b2u = init_mlp_params(kp2, mlp_u, hid_u)
    out_u = jax.block_until_ready(mlp_block(x_u, w1u, b1u, w2u, b2u))
    ref_u = mlp_block_ref(x_u, w1u, b1u, w2u, b2u)
    assert out_u.shape == x_u.shape
    assert jnp.allclose(out_u, ref_u, atol=5e-3, rtol=5e-3), "mismatch (padded dims)"

    mlp_c, hid_c = 128, 256
    x_c = jax.random.normal(kx2, (2, 8, mlp_c), jnp.float32)
    w1c_, b1c_, w2c_, b2c_ = init_mlp_params(kp3, mlp_c, hid_c)
    out_c = jax.block_until_ready(mlp_block(x_c, w1c_, b1c_, w2c_, b2c_, max_tile_h=128))
    ref_c = mlp_block_ref(x_c, w1c_, b1c_, w2c_, b2c_)
    assert out_c.shape == x_c.shape
    assert jnp.allclose(out_c, ref_c, atol=5e-3, rtol=5e-3), "mismatch (chunked path)"

    print("KERNEL_OK")
</pallas_src>

<mosaic_0001>
module attributes {stable_mosaic.version = 11 : i64} {
  func.func @kernel(%arg0: i32, %arg1: memref<16x16xf32, #tpu.memory_space<vmem>>, %arg2: memref<16x32xbf16, #tpu.memory_space<vmem>>, %arg3: memref<1x32xf32, #tpu.memory_space<vmem>>, %arg4: memref<32x16xbf16, #tpu.memory_space<vmem>>, %arg5: memref<1x16xf32, #tpu.memory_space<vmem>>, %arg6: memref<16x16xf32, #tpu.memory_space<vmem>>) attributes {dimension_semantics = [#tpu.dimension_semantics<parallel>], iteration_bounds = array<i64: 1>, scalar_prefetch = 0 : i64, scratch_operands = 0 : i64, tpu.core_type = #tpu.core_type<tc>, window_params = [{transform_indices = @transform_0, window_bounds = array<i64: 16, 16>}, {pipeline_mode = #tpu.pipeline_mode<synchronous>, transform_indices = @transform_1, window_bounds = array<i64: 16, 32>}, {pipeline_mode = #tpu.pipeline_mode<synchronous>, transform_indices = @transform_2, window_bounds = array<i64: 1, 32>}, {pipeline_mode = #tpu.pipeline_mode<synchronous>, transform_indices = @transform_3, window_bounds = array<i64: 32, 16>}, {pipeline_mode = #tpu.pipeline_mode<synchronous>, transform_indices = @transform_4, window_bounds = array<i64: 1, 16>}, {transform_indices = @transform_5, window_bounds = array<i64: 16, 16>}]} {
    %c0 = arith.constant 0 : index
    %c0_0 = arith.constant 0 : index
    %0 = vector.load %arg1[%c0, %c0_0] : memref<16x16xf32, #tpu.memory_space<vmem>>, vector<16x16xf32>
    %1 = arith.truncf %0 : vector<16x16xf32> to vector<16x16xbf16>
    %c0_1 = arith.constant 0 : index
    %c0_2 = arith.constant 0 : index
    %2 = vector.load %arg2[%c0_1, %c0_2] : memref<16x32xbf16, #tpu.memory_space<vmem>>, vector<16x32xbf16>
    %cst = arith.constant dense<0.000000e+00> : vector<16x32xf32>
    %3 = tpu.matmul %1, %2, %cst {dimension_numbers = #tpu.dot_dimension_numbers<[1], [0], [0], [1], [0, 0, 1, 1], [], []>} : vector<16x16xbf16>, vector<16x32xbf16>, vector<16x32xf32> -> vector<16x32xf32>
    %c0_3 = arith.constant 0 : index
    %c0_4 = arith.constant 0 : index
    %4 = vector.load %arg3[%c0_3, %c0_4] : memref<1x32xf32, #tpu.memory_space<vmem>>, vector<1x32xf32>
    %5 = vector.broadcast %4 : vector<1x32xf32> to vector<16x32xf32>
    %6 = arith.addf %3, %5 : vector<16x32xf32>
    %cst_5 = arith.constant 5.000000e-01 : f32
    %7 = vector.broadcast %cst_5 : f32 to vector<16x32xf32>
    %8 = arith.mulf %7, %6 : vector<16x32xf32>
    %cst_6 = arith.constant 0.707106769 : f32
    %9 = vector.broadcast %cst_6 : f32 to vector<16x32xf32>
    %10 = arith.mulf %6, %9 : vector<16x32xf32>
    %11 = math.absf %10 : vector<16x32xf32>
    %cst_7 = arith.constant 0.327591091 : f32
    %12 = vector.broadcast %cst_7 : f32 to vector<16x32xf32>
    %13 = arith.mulf %12, %11 : vector<16x32xf32>
    %cst_8 = arith.constant 1.000000e+00 : f32
    %14 = vector.broadcast %cst_8 : f32 to vector<16x32xf32>
    %15 = arith.addf %14, %13 : vector<16x32xf32>
    %cst_9 = arith.constant 1.000000e+00 : f32
    %16 = vector.broadcast %cst_9 : f32 to vector<16x32xf32>
    %17 = arith.divf %16, %15 : vector<16x32xf32>
    %cst_10 = arith.constant 1.06140542 : f32
    %18 = vector.broadcast %cst_10 : f32 to vector<16x32xf32>
    %19 = arith.mulf %18, %17 : vector<16x32xf32>
    %cst_11 = arith.constant -1.45315206 : f32
    %20 = vector.broadcast %cst_11 : f32 to vector<16x32xf32>
    %21 = arith.addf %19, %20 : vector<16x32xf32>
    %22 = arith.mulf %21, %17 : vector<16x32xf32>
    %cst_12 = arith.constant 1.42141378 : f32
    %23 = vector.broadcast %cst_12 : f32 to vector<16x32xf32>
    %24 = arith.addf %22, %23 : vector<16x32xf32>
    %25 = arith.mulf %24, %17 : vector<16x32xf32>
    %cst_13 = arith.constant -0.284496725 : f32
    %26 = vector.broadcast %cst_13 : f32 to vector<16x32xf32>
    %27 = arith.addf %25, %26 : vector<16x32xf32>
    %28 = arith.mulf %27, %17 : vector<16x32xf32>
    %cst_14 = arith.constant 0.254829586 : f32
    %29 = vector.broadcast %cst_14 : f32 to vector<16x32xf32>
    %30 = arith.addf %28, %29 : vector<16x32xf32>
    %31 = arith.mulf %30, %17 : vector<16x32xf32>
    %32 = arith.mulf %11, %11 : vector<16x32xf32>
    %cst_15 = arith.constant 0.000000e+00 : f32
    %33 = vector.broadcast %cst_15 : f32 to vector<16x32xf32>
    %34 = arith.subf %33, %32 : vector<16x32xf32>
    %35 = math.exp %34 : vector<16x32xf32>
    %36 = arith.mulf %31, %35 : vector<16x32xf32>
    %cst_16 = arith.constant 1.000000e+00 : f32
    %37 = vector.broadcast %cst_16 : f32 to vector<16x32xf32>
    %38 = arith.subf %37, %36 : vector<16x32xf32>
    %cst_17 = arith.constant 0.000000e+00 : f32
    %39 = vector.broadcast %cst_17 : f32 to vector<16x32xf32>
    %40 = arith.cmpf olt, %10, %39 : vector<16x32xf32>
    %cst_18 = arith.constant 0.000000e+00 : f32
    %41 = vector.broadcast %cst_18 : f32 to vector<16x32xf32>
    %42 = arith.subf %41, %38 : vector<16x32xf32>
    %43 = arith.select %40, %42, %38 : vector<16x32xi1>, vector<16x32xf32>
    %cst_19 = arith.constant 1.000000e+00 : f32
    %44 = vector.broadcast %cst_19 : f32 to vector<16x32xf32>
    %45 = arith.addf %44, %43 : vector<16x32xf32>
    %46 = arith.mulf %8, %45 : vector<16x32xf32>
    %47 = arith.truncf %46 : vector<16x32xf32> to vector<16x32xbf16>
    %c0_20 = arith.constant 0 : index
    %c0_21 = arith.constant 0 : index
    %48 = vector.load %arg4[%c0_20, %c0_21] : memref<32x16xbf16, #tpu.memory_space<vmem>>, vector<32x16xbf16>
    %cst_22 = arith.constant dense<0.000000e+00> : vector<16x16xf32>
    %49 = tpu.matmul %47, %48, %cst_22 {dimension_numbers = #tpu.dot_dimension_numbers<[1], [0], [0], [1], [0, 0, 1, 1], [], []>} : vector<16x32xbf16>, vector<32x16xbf16>, vector<16x16xf32> -> vector<16x16xf32>
    %c0_23 = arith.constant 0 : index
    %c0_24 = arith.constant 0 : index
    %50 = vector.load %arg5[%c0_23, %c0_24] : memref<1x16xf32, #tpu.memory_space<vmem>>, vector<1x16xf32>
    %51 = vector.broadcast %50 : vector<1x16xf32> to vector<16x16xf32>
    %52 = arith.addf %49, %51 : vector<16x16xf32>
    %c0_25 = arith.constant 0 : index
    %c0_26 = arith.constant 0 : index
    %53 = vector.load %arg6[%c0_25, %c0_26] : memref<16x16xf32, #tpu.memory_space<vmem>>, vector<16x16xf32>
    tpu.vector_store %arg6[%c0_25, %c0_26], %52 {strides = array<i32>} : memref<16x16xf32, #tpu.memory_space<vmem>>, vector<16x16xf32>,
    return
  }
  func.func @transform_0(%arg0: i32) -> (i32, i32) {
    %c0_i32 = arith.constant 0 : i32
    %c0_i32_0 = arith.constant 0 : i32
    return %arg0, %c0_i32 : i32, i32
  }
  func.func @transform_1(%arg0: i32) -> (i32, i32) {
    %c0_i32 = arith.constant 0 : i32
    %c0_i32_0 = arith.constant 0 : i32
    %c0_i32_1 = arith.constant 0 : i32
    return %c0_i32, %c0_i32_0 : i32, i32
  }
  func.func @transform_2(%arg0: i32) -> (i32, i32) {
    %c0_i32 = arith.constant 0 : i32
    %c0_i32_0 = arith.constant 0 : i32
    %c0_i32_1 = arith.constant 0 : i32
    return %c0_i32, %c0_i32_0 : i32, i32
  }
  func.func @transform_3(%arg0: i32) -> (i32, i32) {
    %c0_i32 = arith.constant 0 : i32
    %c0_i32_0 = arith.constant 0 : i32
    %c0_i32_1 = arith.constant 0 : i32
    return %c0_i32, %c0_i32_0 : i32, i32
  }
  func.func @transform_4(%arg0: i32) -> (i32, i32) {
    %c0_i32 = arith.constant 0 : i32
    %c0_i32_0 = arith.constant 0 : i32
    %c0_i32_1 = arith.constant 0 : i32
    return %c0_i32, %c0_i32_0 : i32, i32
  }
  func.func @transform_5(%arg0: i32) -> (i32, i32) {
    %c0_i32 = arith.constant 0 : i32
    %c0_i32_0 = arith.constant 0 : i32
    return %arg0, %c0_i32 : i32, i32
  }
}

</mosaic_0001>

<bundles_post_ra>
// kernel: tpu_custom_call.1
= control target key start
LH: loop header
LB: loop body
LE: loop exit
PB: predicated region body
PF: predicated region fallthrough
CT: control target
= control target key end

     0   :  { %v292_v1 = vmov 0.0   ;;  %vm40_vm0 = vcmask 130048   ;;  %vm293_vm1 = vmmov 0   ;;  %s363_s0 = inlined_call_operand.vmem [shape: f32[16,16], index: 0, kind: input, shape index: {}]   ;;  %s364_s1 = inlined_call_operand.vmem [shape: bf16[16,32], index: 1, kind: input, shape index: {}]   ;;  %s365_s2 = inlined_call_operand.vmem [shape: f32[1,32], index: 2, kind: input, shape index: {}]   ;;  %s366_s3 = inlined_call_operand.vmem [shape: bf16[32,16], index: 3, kind: input, shape index: {}]   ;;  %s367_s4 = inlined_call_operand.vmem [shape: f32[1,16], index: 4, kind: input, shape index: {}]   ;;  %s368_s5 = inlined_call_operand.hbm [shape: f32[16,16], index: 5, kind: output, shape index: {}]  }
   0x1   :  { %v257_v0 = vld [vmem:[%s364_s1] sm:$0xff]   ;;  %238 = vmatprep.subr.bf16.mxu0 %v292_v1  ;;  %v23_v3 = vld [vmem:[%s363_s0 + $0x8] sm:$0xff]  ;;  %244 = vmatprep.subr.bf16.mxu1 %v292_v1 }
   0x2   :  { %v22_v2 = vld [vmem:[%s363_s0] sm:$0xff]  ;;  %239 = vmatpush3.bf16.msra.mxu0 %v257_v0  ;;  %240 = vmatprep.mubr.msk.bf16.mxu0 %vm293_vm1, %v292_v1 }
   0x3   :  { %v24_v4 = vpack.c.bf16 %v23_v3, %v22_v2  ;;  %248 = vmatprep.mubr.msk.bf16.mxu1 %vm293_vm1, %v292_v1 }
   0x4   :  { %10 = vsyncpa [#allocation3], 0  ;;  %v258_v5 = vld [vmem:[%s366_s3] sm:$0xff]   ;;  %v259_v6 = vld [vmem:[%s366_s3 + $0x8] sm:$0xff]   ;;  %vm163_vm4 = vcmask 261120   ;;  %s294_s28 = smov [#allocation2]  }
   0x5   :  { %241 = vmatmul.mubr.msk.bf16.vlgmr.msra.gmra.mrb[0].mxu0 %vm40_vm0, %v24_v4  ;;  %245 = vmatpush3.bf16.msra.mxu1 %v258_v5  ;;  %v226_v7 = vld [vmem:[%s365_s2] ss:$0 sm:$0xff]  ;;  %s215_s29 = sshll.u32 %s294_s28, 4  ;;  %s216_s29 = int_to_ptr.vmem [resolvable:$true] %s215_s29 }
   0x6   :  { %246 = vmatprep.subr.bf16.mxu1 %v292_v1  ;;  %v229_v1 = vld [vmem:[%s367_s4] ss:$0 sm:$0xff]  ;;  %s268_s30 = scalar_lea.vmem %s216_s29, 256  ;;  %p273_p1 = scmp.lt.s32.totalorder %s216_s29, %s216_s29 }
   0x7   :  { %p269_p0 = scmp.ne.s32.totalorder %s216_s29, %s268_s30  ;;  %p274_p2 = scmp.lt.s32.totalorder %s268_s30, %s268_s30 }
   0x9   :  { %247 = vmatpush3.bf16.msra.mxu1 %v259_v6  ;;  %p275_p3 = por %p274_p2, %p273_p1 }
   0xb   :  { %p276_p4 = pnand %p275_p3, %p269_p0 }
  0xd8   :  { %v78_v8 = vpop.f32.mrb[0].mxu0 }
  0xd9   :  { %v79_v9 = vadd.f32 %v226_v7, %v78_v8  ;;  %v242_v10 = vpop.f32.mrb[1].mxu0 }
  0xda   :  { %v81_v11 = vpop.f32.mrb[2].mxu0 }
  0xdb   :  { %v87_v12 = vmul.f32 0.70710677, %v79_v9  ;;  %v82_v13 = vadd.f32 %v226_v7, %v81_v11  ;;  %v243_v14 = vpop.f32.mrb[3].mxu0  ;;  %v85_v59 = vmul.f32 0.5, %v79_v9 }
  0xdd   :  { %v89_v15 = vand.u32 2147483647, %v87_v12  ;;  %v88_v16 = vmul.f32 0.70710677, %v82_v13  ;;  %vm129_vm2 = vcmp.lt.f32.partialorder %v87_v12, 0.0  ;;  %v86_v60 = vmul.f32 0.5, %v82_v13 }
  0xdf   :  { %v91_v17 = vmul.f32 0.3275911, %v89_v15  ;;  %v90_v18 = vand.u32 2147483647, %v88_v16  ;;  %v117_v22 = vmul.f32 %v89_v15, %v89_v15  ;;  %vm130_vm3 = vcmp.lt.f32.partialorder %v88_v16, 0.0 }
  0xe1   :  { %v93_v19 = vadd.f32 1.0, %v91_v17  ;;  %v92_v20 = vmul.f32 0.3275911, %v90_v18  ;;  %v118_v23 = vmul.f32 %v90_v18, %v90_v18  ;;  %v119_v25 = vsub.f32 0.0, %v117_v22 }
  0xe3   :  { %260 = vrcp.f32 %v93_v19  ;;  %v94_v21 = vadd.f32 1.0, %v92_v20  ;;  %v120_v29 = vsub.f32 0.0, %v118_v23  ;;  %v121_v30 = vmul.f32 1.442695, %v119_v25 }
  0xe5   :  { %262 = vrcp.f32 %v94_v21  ;;  %v123_v35 = vmul.f32 1.442695, %v120_v29 }
  0xe6   :  { %264 = vpow2.f32 %v121_v30 }
  0xe7   :  { %266 = vpow2.f32 %v123_v35 }
  0xed   :  { %v261_v24 = vpop.eup %260 }
  0xee   :  { %v99_v26 = vmul.f32 1.0614054, %v261_v24 }
  0xef   :  { %v263_v27 = vpop.eup %262 }
  0xf0   :  { %v101_v28 = vadd.f32 -1.4531521, %v99_v26  ;;  %v100_v31 = vmul.f32 1.0614054, %v263_v27  ;;  %v265_v46 = vpop.eup %264 }
  0xf1   :  { %v267_v50 = vpop.eup %266 }
  0xf2   :  { %v103_v32 = vmul.f32 %v261_v24, %v101_v28  ;;  %v102_v33 = vadd.f32 -1.4531521, %v100_v31 }
  0xf4   :  { %v105_v34 = vadd.f32 1.4214138, %v103_v32  ;;  %v104_v36 = vmul.f32 %v263_v27, %v102_v33 }
  0xf6   :  { %v107_v37 = vmul.f32 %v261_v24, %v105_v34  ;;  %v106_v38 = vadd.f32 1.4214138, %v104_v36 }
  0xf8   :  { %v109_v39 = vadd.f32 -0.28449672, %v107_v37  ;;  %v108_v40 = vmul.f32 %v263_v27, %v106_v38 }
  0xfa   :  { %v111_v41 = vmul.f32 %v261_v24, %v109_v39  ;;  %v110_v42 = vadd.f32 -0.28449672, %v108_v40 }
  0xfc   :  { %v113_v43 = vadd.f32 0.2548296, %v111_v41  ;;  %v112_v44 = vmul.f32 %v263_v27, %v110_v42 }
  0xfe   :  { %v115_v45 = vmul.f32 %v261_v24, %v113_v43  ;;  %v114_v47 = vadd.f32 0.2548296, %v112_v44 }
 0x100   :  { %v125_v48 = vmul.f32 %v265_v46, %v115_v45  ;;  %v116_v49 = vmul.f32 %v263_v27, %v114_v47 }
 0x102   :  { %v127_v51 = vsub.f32 1.0, %v125_v48  ;;  %v126_v52 = vmul.f32 %v267_v50, %v116_v49 }
 0x104   :  { %v131_v53 = vsub.f32 0.0, %v127_v51  ;;  %v128_v54 = vsub.f32 1.0, %v126_v52 }
 0x106   :  { %v133_v55 = vsel %vm129_vm2, %v131_v53, %v127_v51  ;;  %v132_v56 = vsub.f32 0.0, %v128_v54 }
 0x107   :  { %v135_v57 = vadd.f32 1.0, %v133_v55 }
 0x108   :  { %v134_v58 = vsel %vm130_vm3, %v132_v56, %v128_v54 }
 0x109   :  { %v136_v61 = vadd.f32 1.0, %v134_v58  ;;  %v137_v62 = vmul.f32 %v135_v57, %v85_v59 }
 0x10b   :  { %v138_v63 = vmul.f32 %v136_v61, %v86_v60 }
 0x10d   :  { %v139_v0 = vpack.c.bf16 %v138_v63, %v137_v62 }
 0x10f   :  { %249 = vmatmul.mubr.msk.bf16.vlgmr.msra.gmra.mrb[0].mxu1 %vm163_vm4, %v139_v0 }
 0x1e2   :  { %v201_v2 = vpop.f32.mrb[0].mxu1 }
 0x1e3   :  { %v202_v3 = vadd.f32 %v229_v1, %v201_v2  ;;  %v250_v4 = vpop.f32.mrb[1].mxu1 }
 0x1e4   :  { %v204_v5 = vpop.f32.mrb[2].mxu1 }
 0x1e5   :  { %208 = vst.msk [vmem:[#allocation2] sm:$0xff] %vm40_vm0, %v202_v3  ;;  %v205_v6 = vadd.f32 %v229_v1, %v204_v5  ;;  %v251_v7 = vpop.f32.mrb[3].mxu1 }
 0x1e7   :  { %209 = vst.msk [vmem:[#allocation2 + $0x8] sm:$0xff] %vm40_vm0, %v205_v6 }
 0x1e8   :  { %279 = shalt.err (!%p276_p4)
}
 0x1e9   :  { %s280_s7 = scalar_lea.hbm %s368_s5, 256 }
 0x1ea   :  { %p281_p5 = scmp.ne.s32.totalorder %s368_s5, %s280_s7  ;;  %p284_p6 = scmp.lt.u32.totalorder %s280_s7, %s368_s5 }
 0x1ec   :  { %p286_p7 = pnand %p284_p6, %p281_p5 }
 0x1ee   :  { %289 = shalt.err (!%p286_p7)
}
 0x1ef   :  { %s295_s12 = smov 128   ;;  %s296_s13 = smov 8  }
 0x1f0   :  { %221 = dma.vmem_to_hbm [thread:$0]  %s216_s29, 256, %s368_s5, [#allocation3], %s295_s12, %s295_s12, %s296_s13  }
 0x1f1   :  { %290 = dma.done.wait [#allocation3], 256  }
 0x1f2   :  { %291 = vsyncadd [#allocation3], 4294967040 }
 0x1f3   :  { %225 = vsyncpa [#allocation3], 1 }

</bundles_post_ra>
